<compile_context>
chip_gen: v6e
topology: v6e:2x2x1
jax: 0.10.0
libtpu: 0.0.40
codegen_flags: <defaults>
</compile_context>

<pallas_src>
import functools

import jax
import jax.numpy as jnp
from jax import lax
from jax.experimental import pallas as pl
from jax.experimental.pallas import tpu as pltpu

_D_IN, _D_H1, _D_H2, _D_OUT = 84, 120, 40, 2
_OUT_PAD = 8      # narrow, sublane-legal padded output width (was 128)
_SUB_ROWS = 128   # rows per in-kernel sub-chunk (keeps h1/h2 vreg-resident)


def _mlp_kernel(x_ref, w1_ref, b1_ref, w2_ref, b2_ref, w3_ref, b3_ref, o_ref,
                *, sub_rows):
    """Fused 3-layer MLP over one (tile, 84) batch block.

    The batch tile is processed in `sub_rows`-row sub-chunks so the h1/h2
    intermediates fit in the vector register file instead of bouncing through
    VMEM.  All three matmuls hit the MXU with f32 accumulation; weights and
    biases are VMEM-resident for the whole grid (constant index_map)."""
    n_sub = x_ref.shape[0] // sub_rows

    def body(c, carry):
        r = pl.multiple_of(c * sub_rows, sub_rows)
        xs = x_ref[pl.ds(r, sub_rows), :]
        h1 = jnp.dot(xs, w1_ref[...], preferred_element_type=jnp.float32)
        h1 = jnp.maximum(h1 + b1_ref[...], 0.0)
        h2 = jnp.dot(h1.astype(w2_ref.dtype), w2_ref[...],
                     preferred_element_type=jnp.float32)
        h2 = jnp.maximum(h2 + b2_ref[...], 0.0)
        y = jnp.dot(h2.astype(w3_ref.dtype), w3_ref[...],
                    preferred_element_type=jnp.float32) + b3_ref[...]
        o_ref[pl.ds(r, sub_rows), :] = y.astype(o_ref.dtype)
        return carry

    lax.fori_loop(0, n_sub, body, 0, unroll=True)


def _round_up(x, m):
    return (x + m - 1) // m * m


def len_layer_forward(x, params, *, batch_tile=2048, sub_rows=_SUB_ROWS):
    """LeNLayer forward pass via one fused Pallas kernel.

    x: [B, 84] (f32 or bf16 -- operand dtype follows x.dtype; the wrapper never
    casts x, so a bf16 producer gives an end-to-end bf16 MXU path with f32
    accumulation).  params: w1[84,120], b1[120], w2[120,40], b2[40], w3[40,2],
    b3[2] (float32).  Returns [B, 2] float32 logits."""
    B, d_in = x.shape
    assert d_in == _D_IN
    op_dtype = x.dtype

    # Tile selection: sublane-aligned, tile a multiple of the sub-chunk, no
    # forced grid split (single-TC chips gain nothing from it).
    sub = min(int(sub_rows), _round_up(B, 8))
    tile = min(int(batch_tile), _round_up(B, sub))
    tile = max(sub, _round_up(tile, sub))
    n_steps = pl.cdiv(B, tile)   # Pallas masks the partial tail block

    # Weights are tiny; cast once to the operand dtype.  Last layer is padded
    # from 2 to 8 output columns (keeps the out BlockSpec legal while keeping
    # the output HBM stream narrow: 32 B/row f32).
    w1 = params["w1"].astype(op_dtype)
    w2 = params["w2"].astype(op_dtype)
    w3 = jnp.pad(params["w3"], ((0, 0), (0, _OUT_PAD - _D_OUT))).astype(op_dtype)
    b1 = params["b1"].reshape(1, -1).astype(jnp.float32)
    b2 = params["b2"].reshape(1, -1).astype(jnp.float32)
    b3 = jnp.pad(params["b3"].reshape(1, -1),
                 ((0, 0), (0, _OUT_PAD - _D_OUT))).astype(jnp.float32)

    # Weights / biases: one full-array block with a constant index_map, so they
    # are DMA'd once and stay VMEM-resident across all grid steps.
    def const(shape):
        return pl.BlockSpec(shape, lambda i: (0, 0))

    flops = 2 * B * (_D_IN * _D_H1 + _D_H1 * _D_H2 + _D_H2 * _OUT_PAD)
    bytes_accessed = (
        B * _D_IN * x.dtype.itemsize          # x read (dominant stream)
        + B * _OUT_PAD * 4                    # narrow f32 output write
        + (w1.size + w2.size + w3.size) * w1.dtype.itemsize
        + (b1.size + b2.size + b3.size) * 4
    )

    out = pl.pallas_call(
        functools.partial(_mlp_kernel, sub_rows=sub),
        out_shape=jax.ShapeDtypeStruct((B, _OUT_PAD), jnp.float32),
        grid_spec=pltpu.PrefetchScalarGridSpec(
            num_scalar_prefetch=0,
            grid=(n_steps,),
            in_specs=[
                pl.BlockSpec((tile, _D_IN), lambda i: (i, 0)),
                const(w1.shape), const(b1.shape),
                const(w2.shape), const(b2.shape),
                const(w3.shape), const(b3.shape),
            ],
            out_specs=pl.BlockSpec((tile, _OUT_PAD), lambda i: (i, 0)),
        ),
        # On v7x, switch the batch axis to pltpu.CORE_PARALLEL (and keep
        # n_steps even) to shard the grid across the two TensorCores; plain
        # "parallel" is kept here because it is safe on every generation.
        compiler_params=pltpu.CompilerParams(
            dimension_semantics=("parallel",),
        ),
        cost_estimate=pl.CostEstimate(
            flops=flops, transcendentals=0, bytes_accessed=bytes_accessed
        ),
    )(x, w1, b1, w2, b2, w3, b3)

    # Trivial 32 B/row -> 8 B/row slice back to the 2 real logit columns.
    return out[:, :_D_OUT]


def init_params(key):
    """Deterministic init mimicking PyTorch nn.Linear (uniform +-1/sqrt(fan_in))."""
    dims = [(_D_IN, _D_H1), (_D_H1, _D_H2), (_D_H2, _D_OUT)]
    params = {}
    keys = jax.random.split(key, 2 * len(dims))
    for idx, (fan_in, fan_out) in enumerate(dims):
        bound = 1.0 / jnp.sqrt(float(fan_in))
        params[f"w{idx + 1}"] = jax.random.uniform(
            keys[2 * idx], (fan_in, fan_out), jnp.float32, -bound, bound
        )
        params[f"b{idx + 1}"] = jax.random.uniform(
            keys[2 * idx + 1], (fan_out,), jnp.float32, -bound, bound
        )
    return params


def _reference_forward(x, params):
    h1 = jnp.maximum(x @ params["w1"] + params["b1"], 0.0)
    h2 = jnp.maximum(h1 @ params["w2"] + params["b2"], 0.0)
    return h2 @ params["w3"] + params["b3"]


if __name__ == "__main__":
    key = jax.random.PRNGKey(0)
    pkey, xkey1, xkey2 = jax.random.split(key, 3)
    params = init_params(pkey)

    # Small batch: single grid step, tile shrinks to the 8-row batch.
    B1 = 8
    x1 = jax.random.normal(xkey1, (B1, _D_IN), jnp.float32)
    out1 = jax.block_until_ready(len_layer_forward(x1, params))
    ref1 = _reference_forward(x1, params)
    assert out1.shape == (B1, _D_OUT)
    assert jnp.allclose(out1, ref1, atol=1e-4, rtol=1e-4), "mismatch vs JAX reference (B=8)"

    # Non-divisible batch with a small tile: exercises the multi-step grid and
    # the masked partial tail block (no wrapper-side padding of x).
    B2 = 300
    x2 = jax.random.normal(xkey2, (B2, _D_IN), jnp.float32)
    out2 = jax.block_until_ready(len_layer_forward(x2, params, batch_tile=256))
    ref2 = _reference_forward(x2, params)
    assert out2.shape == (B2, _D_OUT)
    assert jnp.allclose(out2, ref2, atol=1e-4, rtol=1e-4), "mismatch vs JAX reference (B=300)"

    # bf16-from-the-producer path: x already arrives bf16, so the kernel runs
    # the fast bf16 MXU operand path (f32 accumulation) with no wrapper cast.
    x2_bf16 = jax.random.normal(xkey2, (B2, _D_IN), jnp.bfloat16)
    out_bf16 = jax.block_until_ready(len_layer_forward(x2_bf16, params, batch_tile=256))
    assert out_bf16.shape == (B2, _D_OUT)
    assert bool(jnp.all(jnp.isfinite(out_bf16)))

    # p(x) head (scalar softmax probability of class 1 for row 0) -- pure glue,
    # computed outside the kernel.
    p = jnp.exp(out1[0, 1]) / (jnp.exp(out1[0, 0]) + jnp.exp(out1[0, 1]))
    jax.block_until_ready(p)

    print("KERNEL_OK")
</pallas_src>

<mosaic_0001>
module attributes {stable_mosaic.version = 11 : i64} {
  func.func @_mlp_kernel(%arg0: i32, %arg1: memref<8x84xf32, #tpu.memory_space<vmem>>, %arg2: memref<84x120xf32, #tpu.memory_space<vmem>>, %arg3: memref<1x120xf32, #tpu.memory_space<vmem>>, %arg4: memref<120x40xf32, #tpu.memory_space<vmem>>, %arg5: memref<1x40xf32, #tpu.memory_space<vmem>>, %arg6: memref<40x8xf32, #tpu.memory_space<vmem>>, %arg7: memref<1x8xf32, #tpu.memory_space<vmem>>, %arg8: memref<8x8xf32, #tpu.memory_space<vmem>>) attributes {dimension_semantics = [#tpu.dimension_semantics<parallel>], iteration_bounds = array<i64: 1>, scalar_prefetch = 0 : i64, scratch_operands = 0 : i64, tpu.core_type = #tpu.core_type<tc>, window_params = [{transform_indices = @transform_0, window_bounds = array<i64: 8, 84>}, {pipeline_mode = #tpu.pipeline_mode<synchronous>, transform_indices = @transform_1, window_bounds = array<i64: 84, 120>}, {pipeline_mode = #tpu.pipeline_mode<synchronous>, transform_indices = @transform_2, window_bounds = array<i64: 1, 120>}, {pipeline_mode = #tpu.pipeline_mode<synchronous>, transform_indices = @transform_3, window_bounds = array<i64: 120, 40>}, {pipeline_mode = #tpu.pipeline_mode<synchronous>, transform_indices = @transform_4, window_bounds = array<i64: 1, 40>}, {pipeline_mode = #tpu.pipeline_mode<synchronous>, transform_indices = @transform_5, window_bounds = array<i64: 40, 8>}, {pipeline_mode = #tpu.pipeline_mode<synchronous>, transform_indices = @transform_6, window_bounds = array<i64: 1, 8>}, {transform_indices = @transform_7, window_bounds = array<i64: 8, 8>}]} {
    %c0_i32 = arith.constant 0 : i32
    %c8_i32 = arith.constant 8 : i32
    %0 = arith.muli %c0_i32, %c8_i32 : i32
    %1 = tpu.assume_multiple %0, 8 : i32
    %2 = arith.index_cast %1 : i32 to index
    %c0 = arith.constant 0 : index
    %3 = vector.load %arg1[%2, %c0] : memref<8x84xf32, #tpu.memory_space<vmem>>, vector<8x84xf32>
    %c0_0 = arith.constant 0 : index
    %c0_1 = arith.constant 0 : index
    %4 = vector.load %arg2[%c0_0, %c0_1] : memref<84x120xf32, #tpu.memory_space<vmem>>, vector<84x120xf32>
    %cst = arith.constant dense<0.000000e+00> : vector<8x120xf32>
    %5 = tpu.matmul %3, %4, %cst {dimension_numbers = #tpu.dot_dimension_numbers<[1], [0], [0], [1], [0, 0, 1, 1], [], []>} : vector<8x84xf32>, vector<84x120xf32>, vector<8x120xf32> -> vector<8x120xf32>
    %c0_2 = arith.constant 0 : index
    %c0_3 = arith.constant 0 : index
    %6 = vector.load %arg3[%c0_2, %c0_3] : memref<1x120xf32, #tpu.memory_space<vmem>>, vector<1x120xf32>
    %7 = vector.broadcast %6 : vector<1x120xf32> to vector<8x120xf32>
    %8 = arith.addf %5, %7 : vector<8x120xf32>
    %cst_4 = arith.constant 0.000000e+00 : f32
    %9 = vector.broadcast %cst_4 : f32 to vector<8x120xf32>
    %10 = arith.maximumf %8, %9 : vector<8x120xf32>
    %c0_5 = arith.constant 0 : index
    %c0_6 = arith.constant 0 : index
    %11 = vector.load %arg4[%c0_5, %c0_6] : memref<120x40xf32, #tpu.memory_space<vmem>>, vector<120x40xf32>
    %cst_7 = arith.constant dense<0.000000e+00> : vector<8x40xf32>
    %12 = tpu.matmul %10, %11, %cst_7 {dimension_numbers = #tpu.dot_dimension_numbers<[1], [0], [0], [1], [0, 0, 1, 1], [], []>} : vector<8x120xf32>, vector<120x40xf32>, vector<8x40xf32> -> vector<8x40xf32>
    %c0_8 = arith.constant 0 : index
    %c0_9 = arith.constant 0 : index
    %13 = vector.load %arg5[%c0_8, %c0_9] : memref<1x40xf32, #tpu.memory_space<vmem>>, vector<1x40xf32>
    %14 = vector.broadcast %13 : vector<1x40xf32> to vector<8x40xf32>
    %15 = arith.addf %12, %14 : vector<8x40xf32>
    %cst_10 = arith.constant 0.000000e+00 : f32
    %16 = vector.broadcast %cst_10 : f32 to vector<8x40xf32>
    %17 = arith.maximumf %15, %16 : vector<8x40xf32>
    %c0_11 = arith.constant 0 : index
    %c0_12 = arith.constant 0 : index
    %18 = vector.load %arg6[%c0_11, %c0_12] : memref<40x8xf32, #tpu.memory_space<vmem>>, vector<40x8xf32>
    %cst_13 = arith.constant dense<0.000000e+00> : vector<8x8xf32>
    %19 = tpu.matmul %17, %18, %cst_13 {dimension_numbers = #tpu.dot_dimension_numbers<[1], [0], [0], [1], [0, 0, 1, 1], [], []>} : vector<8x40xf32>, vector<40x8xf32>, vector<8x8xf32> -> vector<8x8xf32>
    %c0_14 = arith.constant 0 : index
    %c0_15 = arith.constant 0 : index
    %20 = vector.load %arg7[%c0_14, %c0_15] : memref<1x8xf32, #tpu.memory_space<vmem>>, vector<1x8xf32>
    %21 = vector.broadcast %20 : vector<1x8xf32> to vector<8x8xf32>
    %22 = arith.addf %19, %21 : vector<8x8xf32>
    %23 = arith.index_cast %1 : i32 to index
    %c0_16 = arith.constant 0 : index
    %24 = vector.load %arg8[%23, %c0_16] : memref<8x8xf32, #tpu.memory_space<vmem>>, vector<8x8xf32>
    tpu.vector_store %arg8[%23, %c0_16], %22 {strides = array<i32>} : memref<8x8xf32, #tpu.memory_space<vmem>>, vector<8x8xf32>,
    %c1_i32 = arith.constant 1 : i32
    return
  }
  func.func @transform_0(%arg0: i32) -> (i32, i32) {
    %c0_i32 = arith.constant 0 : i32
    %c0_i32_0 = arith.constant 0 : i32
    return %arg0, %c0_i32 : i32, i32
  }
  func.func @transform_1(%arg0: i32) -> (i32, i32) {
    %c0_i32 = arith.constant 0 : i32
    %c0_i32_0 = arith.constant 0 : i32
    %c0_i32_1 = arith.constant 0 : i32
    return %c0_i32, %c0_i32_0 : i32, i32
  }
  func.func @transform_2(%arg0: i32) -> (i32, i32) {
    %c0_i32 = arith.constant 0 : i32
    %c0_i32_0 = arith.constant 0 : i32
    %c0_i32_1 = arith.constant 0 : i32
    return %c0_i32, %c0_i32_0 : i32, i32
  }
  func.func @transform_3(%arg0: i32) -> (i32, i32) {
    %c0_i32 = arith.constant 0 : i32
    %c0_i32_0 = arith.constant 0 : i32
    %c0_i32_1 = arith.constant 0 : i32
    return %c0_i32, %c0_i32_0 : i32, i32
  }
  func.func @transform_4(%arg0: i32) -> (i32, i32) {
    %c0_i32 = arith.constant 0 : i32
    %c0_i32_0 = arith.constant 0 : i32
    %c0_i32_1 = arith.constant 0 : i32
    return %c0_i32, %c0_i32_0 : i32, i32
  }
  func.func @transform_5(%arg0: i32) -> (i32, i32) {
    %c0_i32 = arith.constant 0 : i32
    %c0_i32_0 = arith.constant 0 : i32
    %c0_i32_1 = arith.constant 0 : i32
    return %c0_i32, %c0_i32_0 : i32, i32
  }
  func.func @transform_6(%arg0: i32) -> (i32, i32) {
    %c0_i32 = arith.constant 0 : i32
    %c0_i32_0 = arith.constant 0 : i32
    %c0_i32_1 = arith.constant 0 : i32
    return %c0_i32, %c0_i32_0 : i32, i32
  }
  func.func @transform_7(%arg0: i32) -> (i32, i32) {
    %c0_i32 = arith.constant 0 : i32
    %c0_i32_0 = arith.constant 0 : i32
    return %arg0, %c0_i32 : i32, i32
  }
}

</mosaic_0001>

<bundles_post_ra>
// kernel: tpu_custom_call.1
= control target key start
LH: loop header
LB: loop body
LE: loop exit
PB: predicated region body
PF: predicated region fallthrough
CT: control target
= control target key end

     0   :  { %vm50_vm0 = vcmask 1043456   ;;  %v461_v1 = vmov 0.0   ;;  %vm462_vm1 = vmmov 0   ;;  %s649_s0 = inlined_call_operand.vmem [shape: f32[8,84], index: 0, kind: input, shape index: {}]   ;;  %s650_s1 = inlined_call_operand.vmem [shape: f32[84,120], index: 1, kind: input, shape index: {}]   ;;  %s651_s2 = inlined_call_operand.vmem [shape: f32[1,120], index: 2, kind: input, shape index: {}]   ;;  %s652_s3 = inlined_call_operand.vmem [shape: f32[120,40], index: 3, kind: input, shape index: {}]   ;;  %s653_s4 = inlined_call_operand.vmem [shape: f32[1,40], index: 4, kind: input, shape index: {}]   ;;  %s654_s5 = inlined_call_operand.vmem [shape: f32[40,8], index: 5, kind: input, shape index: {}]   ;;  %s655_s6 = inlined_call_operand.vmem [shape: f32[1,8], index: 6, kind: input, shape index: {}]   ;;  %s656_s7 = inlined_call_operand.hbm [shape: f32[8,8], index: 7, kind: output, shape index: {}]  }
   0x1   :  { %v38_v0 = vld [vmem:[%s650_s1 + $0x50] sm:$0xf]  ;;  %365 = vmatprep.subr.mxu0 %v461_v1  ;;  %v37_v2 = vld [vmem:[%s650_s1 + $0x48] sm:$0xff]  ;;  %390 = vmatprep.subr.mxu1 %v461_v1  ;;  %v36_v3 = vld [vmem:[%s650_s1 + $0x40] sm:$0xff] }
   0x2   :  { %366 = vmatpush3.msk.msra.mxu0 %vm50_vm0, %v38_v0  ;;  %387 = vmatprep.mubr.msk.f32.mxu0 %vm462_vm1, %v461_v1  ;;  %v139_v4 = vld [vmem:[%s652_s3 + $0x70] sm:$0xff]  ;;  %v138_v5 = vld [vmem:[%s652_s3 + $0x68] sm:$0xff]  ;;  %v35_v6 = vld [vmem:[%s650_s1 + $0x38] sm:$0xff] }
   0x3   :  { %367 = vmatprep.subr.mxu0 %v461_v1  ;;  %420 = vmatprep.mubr.msk.f32.mxu1 %vm462_vm1, %v461_v1  ;;  %v137_v7 = vld [vmem:[%s652_s3 + $0x60] sm:$0xff]  ;;  %v34_v8 = vld [vmem:[%s650_s1 + $0x30] sm:$0xff]  ;;  %v136_v9 = vld [vmem:[%s652_s3 + $0x58] sm:$0xff] }
   0x4   :  { %368 = vmatpush3.msra.mxu0 %v37_v2  ;;  %391 = vmatpush3.msra.mxu1 %v139_v4 }
   0x5   :  { %369 = vmatprep.subr.mxu0 %v461_v1  ;;  %392 = vmatprep.subr.mxu1 %v461_v1 }
   0x6   :  { %370 = vmatpush3.msra.mxu0 %v36_v3  ;;  %393 = vmatpush3.msra.mxu1 %v138_v5 }
   0x7   :  { %371 = vmatprep.subr.mxu0 %v461_v1  ;;  %394 = vmatprep.subr.mxu1 %v461_v1 }
   0x8   :  { %372 = vmatpush3.msra.mxu0 %v35_v6 }
   0x9   :  { %12 = vsyncpa [#allocation3], 0  ;;  %373 = vmatprep.subr.mxu0 %v461_v1  ;;  %v33_v10 = vld [vmem:[%s650_s1 + $0x28] sm:$0xff]  ;;  %395 = vmatpush3.msra.mxu1 %v137_v7  ;;  %v135_v11 = vld [vmem:[%s652_s3 + $0x50] sm:$0xff]  ;;  %vm46_vm2 = vcmask 687104   ;;  %vm147_vm3 = vcmask 982016  }
   0xa   :  { %374 = vmatpush3.msra.mxu0 %v34_v8  ;;  %396 = vmatprep.subr.mxu1 %v461_v1  ;;  %v32_v12 = vld [vmem:[%s650_s1 + $0x20] sm:$0xff]  ;;  %v134_v13 = vld [vmem:[%s652_s3 + $0x48] sm:$0xff]  ;;  %v31_v14 = vld [vmem:[%s650_s1 + $0x18] sm:$0xff]  ;;  %vm234_vm4 = vcmask 326656   ;;  %s463_s21 = smov [#allocation2]   ;;  %vm308_vm5 = vcmask 64512  }
   0xb   :  { %375 = vmatprep.subr.mxu0 %v461_v1  ;;  %397 = vmatpush3.msra.mxu1 %v136_v9  ;;  %v133_v15 = vld [vmem:[%s652_s3 + $0x40] sm:$0xff]  ;;  %v30_v16 = vld [vmem:[%s650_s1 + $0x10] sm:$0xff]  ;;  %v132_v17 = vld [vmem:[%s652_s3 + $0x38] sm:$0xff] }
   0xc   :  { %376 = vmatpush3.msra.mxu0 %v33_v10  ;;  %398 = vmatprep.subr.mxu1 %v461_v1  ;;  %v29_v18 = vld [vmem:[%s650_s1 + $0x8] sm:$0xff]  ;;  %v131_v19 = vld [vmem:[%s652_s3 + $0x30] sm:$0xff]  ;;  %v28_v20 = vld [vmem:[%s650_s1] sm:$0xff]  ;;  %s316_s1 = sshll.u32 %s463_s21, 4  ;;  %s317_s1 = int_to_ptr.vmem [resolvable:$true] %s316_s1 }
   0xd   :  { %377 = vmatprep.subr.mxu0 %v461_v1  ;;  %399 = vmatpush3.msra.mxu1 %v135_v11  ;;  %v27_v21 = vld [vmem:[%s649_s0] sm:$0xff]  ;;  %v130_v22 = vld [vmem:[%s652_s3 + $0x28] sm:$0xff]  ;;  %v128_v24 = vld [vmem:[%s652_s3 + $0x18] sm:$0xff]  ;;  %p444_p1 = scmp.lt.s32.totalorder %s317_s1, %s317_s1 }
   0xe   :  { %378 = vmatpush3.msra.mxu0 %v32_v12  ;;  %400 = vmatprep.subr.mxu1 %v461_v1  ;;  %v129_v23 = vld [vmem:[%s652_s3 + $0x20] sm:$0xff]  ;;  %v127_v25 = vld [vmem:[%s652_s3 + $0x10] sm:$0xff]  ;;  %v126_v26 = vld [vmem:[%s652_s3 + $0x8] sm:$0xff] }
   0xf   :  { %379 = vmatprep.subr.mxu0 %v461_v1  ;;  %401 = vmatpush3.msra.mxu1 %v134_v13  ;;  %v125_v27 = vld [vmem:[%s652_s3] sm:$0xff]  ;;  %v225_v29 = vld [vmem:[%s654_s5 + $0x18] sm:$0xff]  ;;  %v224_v35 = vld [vmem:[%s654_s5 + $0x10] sm:$0xff] }
  0x10   :  { %380 = vmatpush3.msra.mxu0 %v31_v14  ;;  %402 = vmatprep.subr.mxu1 %v461_v1  ;;  %v226_v28 = vld [vmem:[%s654_s5 + $0x20] sm:$0xff]  ;;  %v223_v36 = vld [vmem:[%s654_s5 + $0x8] sm:$0xff] }
  0x11   :  { %381 = vmatprep.subr.mxu0 %v461_v1  ;;  %403 = vmatpush3.msra.mxu1 %v133_v15  ;;  %v324_v30 = vld [vmem:[%s651_s2] ss:$0 sm:$0xff] }
  0x12   :  { %382 = vmatpush3.msra.mxu0 %v30_v16  ;;  %404 = vmatprep.subr.mxu1 %v461_v1  ;;  %v222_v37 = vld [vmem:[%s654_s5] sm:$0xff]  ;;  %s439_s5 = scalar_lea.vmem %s317_s1, 128 }
  0x13   :  { %383 = vmatprep.subr.mxu0 %v461_v1  ;;  %405 = vmatpush3.msra.mxu1 %v132_v17  ;;  %v327_v38 = vld [vmem:[%s653_s4] ss:$0 sm:$0xff]  ;;  %p440_p0 = scmp.ne.s32.totalorder %s317_s1, %s439_s5  ;;  %p445_p2 = scmp.lt.s32.totalorder %s439_s5, %s439_s5 }
  0x14   :  { %384 = vmatpush3.msra.mxu0 %v29_v18  ;;  %406 = vmatprep.subr.mxu1 %v461_v1  ;;  %v329_v43 = vld [vmem:[%s655_s6] ss:$0 sm:$0xff] }
  0x15   :  { %385 = vmatprep.subr.mxu0 %v461_v1  ;;  %407 = vmatpush3.msra.mxu1 %v131_v19  ;;  %p446_p3 = por %p445_p2, %p444_p1 }
  0x16   :  { %386 = vmatpush3.msra.mxu0 %v28_v20  ;;  %408 = vmatprep.subr.mxu1 %v461_v1 }
  0x17   :  { %388 = vmatmul.mubr.msk.f32.vlgmr.msra.gmra.mxu0 %vm46_vm2, %v27_v21  ;;  %409 = vmatpush3.msra.mxu1 %v130_v22  ;;  %p447_p4 = pnand %p446_p3, %p440_p0 }
  0x18   :  { %410 = vmatprep.subr.mxu1 %v461_v1  ;;  %423 = vmatprep.subr.mxu0 %v461_v1 }
  0x19   :  { %411 = vmatpush3.msra.mxu1 %v129_v23  ;;  %433 = vmatprep.mubr.msk.f32.mxu0 %vm462_vm1, %v461_v1 }
  0x1a   :  { %412 = vmatprep.subr.mxu1 %v461_v1  ;;  %424 = vmatpush3.msra.mxu0 %v226_v28 }
  0x1b   :  { %413 = vmatpush3.msra.mxu1 %v128_v24  ;;  %425 = vmatprep.subr.mxu0 %v461_v1 }
  0x1c   :  { %414 = vmatprep.subr.mxu1 %v461_v1  ;;  %426 = vmatpush3.msra.mxu0 %v225_v29 }
  0x1d   :  { %415 = vmatpush3.msra.mxu1 %v127_v25  ;;  %427 = vmatprep.subr.mxu0 %v461_v1 }
  0x1e   :  { %416 = vmatprep.subr.mxu1 %v461_v1  ;;  %428 = vmatpush3.msra.mxu0 %v224_v35 }
  0x1f   :  { %417 = vmatpush3.msra.mxu1 %v126_v26  ;;  %429 = vmatprep.subr.mxu0 %v461_v1 }
  0x20   :  { %418 = vmatprep.subr.mxu1 %v461_v1  ;;  %430 = vmatpush3.msra.mxu0 %v223_v36 }
  0x21   :  { %419 = vmatpush3.msra.mxu1 %v125_v27  ;;  %431 = vmatprep.subr.mxu0 %v461_v1 }
  0x22   :  { %432 = vmatpush3.msra.mxu0 %v222_v37 }
  0xd7   :  { %v120_v31 = vpop.f32.mrf.mxu0 }
  0xd8   :  { %v121_v32 = vadd.f32 %v324_v30, %v120_v31 }
  0xd9   :  { %v389_v33 = vpop.f32.mrf.mxu0 }
  0xda   :  { %v124_v34 = vmax.f32 %v121_v32, 0.0 }
  0xdc   :  { %421 = vmatmul.mubr.msk.f32.vlgmr.msra.gmra.mxu1 %vm147_vm3, %v124_v34 }
 0x19c   :  { %v217_v39 = vpop.f32.mrf.mxu1 }
 0x19d   :  { %v218_v40 = vadd.f32 %v327_v38, %v217_v39 }
 0x19e   :  { %v422_v41 = vpop.f32.mrf.mxu1 }
 0x19f   :  { %v221_v42 = vmax.f32 %v218_v40, 0.0 }
 0x1a1   :  { %434 = vmatmul.mubr.msk.f32.vlgmr.msra.gmra.mxu0 %vm234_vm4, %v221_v42 }
 0x261   :  { %v304_v44 = vpop.f32.mrf.mxu0 }
 0x262   :  { %v305_v45 = vadd.f32 %v329_v43, %v304_v44 }
 0x263   :  { %v435_v46 = vpop.f32.mrf.mxu0 }
 0x264   :  { %309 = vst.msk [vmem:[#allocation2] sm:$0xff] %vm308_vm5, %v305_v45 }
 0x265   :  { %450 = shalt.err (!%p447_p4)
}
 0x266   :  { %319 = dma.vmem_to_hbm [thread:$0]  %s317_s1, 128, %s656_s7, [#allocation3]  }
 0x267   :  { %459 = dma.done.wait [#allocation3], 128  }
 0x268   :  { %460 = vsyncadd [#allocation3], 4294967168 }
 0x269   :  { %323 = vsyncpa [#allocation3], 1 }

</bundles_post_ra>
